<compile_context>
chip_gen: v5e
topology: v5e:2x2
jax: 0.10.0
libtpu: 0.0.40
codegen_flags: <defaults>
</compile_context>

<pallas_src>
import functools

import numpy as np

import jax
import jax.numpy as jnp
from jax.experimental import pallas as pl
from jax.experimental.pallas import tpu as pltpu


def _round_up(a, m):
    return -(-a // m) * m


def _make_multitype_kernel(segments, total, use_s_matmul):
    """segments: static tuple of (start, size) row ranges in the packed logits^T."""
    identity_segs = tuple((s, v) for s, v in segments if v == 1)

    def kernel(x_ref, wt_ref, b_ref, *rest):
        if use_s_matmul:
            s_ref, o_ref = rest
        else:
            (o_ref,) = rest

        # logits^T: (T, TB).  "NT" matmul: contract the Z axis of W^T (T, Z)
        # with the Z axis of x (TB, Z).  Native-dtype operands on the MXU,
        # f32 accumulate / activation math.
        logits = jax.lax.dot_general(
            wt_ref[...], x_ref[...],
            dimension_numbers=(((1,), (1,)), ((), ())),
            preferred_element_type=jnp.float32)
        logits = logits + b_ref[...].astype(jnp.float32)          # (T, TB)

        # Hoisted row iota (T, 1): segment masks broadcast along lanes, so the
        # per-segment work is a handful of lane-dense vreg ops + a tiny
        # sublane (XLU) reduce, not a full-width masked lane reduce.
        row = jax.lax.broadcasted_iota(jnp.int32, (total, 1), 0)

        # Per-row segment max (stable softmax).  Static, unrolled loop.
        m_full = jnp.zeros_like(logits)
        for start, size in segments:
            mask = (row >= start) & (row < start + size)           # (T, 1)
            seg_max = jnp.max(jnp.where(mask, logits, -jnp.inf),
                              axis=0, keepdims=True)               # (1, TB)
            m_full = jnp.where(mask, seg_max, m_full)

        # One EUP exp pass over the whole lane-dense block.
        e = jnp.exp(logits - m_full)

        if use_s_matmul:
            # Per-segment denominators via one tiny MXU matmul against the
            # static block-diagonal ones matrix S: denom[r, :] = sum of e over
            # r's segment.  Free filler on the otherwise idle MXU for small T.
            denom = jnp.dot(s_ref[...], e, preferred_element_type=jnp.float32)
        else:
            # Scale-safe path for large T: masked sublane sums per segment
            # (avoids the T^2 S-matrix DMA and the TB*T^2 matmul FLOPs).
            denom = jnp.zeros_like(e)
            for start, size in segments:
                mask = (row >= start) & (row < start + size)
                seg_sum = jnp.sum(jnp.where(mask, e, 0.0),
                                  axis=0, keepdims=True)
                denom = jnp.where(mask, seg_sum, denom)

        # Exact divide keeps ~1e-6 relative accuracy; one lane-dense VPU pass
        # over a tiny block, well off the HBM-bound critical path.
        soft = e / denom

        if identity_segs:
            # Size-1 variables: LeakyReLU(1) == identity on the raw logits.
            ident = row < 0
            for start, size in identity_segs:
                ident = ident | ((row >= start) & (row < start + size))
            out = jnp.where(ident, logits, soft)
        else:
            out = soft

        # Single lane-dense (unmasked) store of the full (T, batch_tile) block.
        o_ref[...] = out.astype(o_ref.dtype)

    return kernel


def _vmem_bytes(batch_tile, Z, T, x_itemsize, out_itemsize, use_s_matmul):
    """Lane-padding-aware VMEM estimate for one grid step: double-buffered
    pipelined x/out blocks + resident params + in-kernel f32 temporaries."""
    x_buf = 2 * _round_up(batch_tile, 8) * _round_up(Z, 128) * x_itemsize
    o_buf = 2 * _round_up(T, 8) * _round_up(batch_tile, 128) * out_itemsize
    w_buf = _round_up(T, 8) * _round_up(Z, 128) * 4
    b_buf = _round_up(T, 8) * 128 * 4
    s_buf = _round_up(T, 8) * _round_up(T, 128) * 4 if use_s_matmul else 0
    # ~6 simultaneously-live f32 (T, batch_tile) temporaries
    # (logits, m_full, e, denom, soft, out).
    tmp = 6 * _round_up(T, 8) * _round_up(batch_tile, 128) * 4
    return x_buf + o_buf + w_buf + b_buf + s_buf + tmp


def _pick_batch_tile(B, Z, T, x_itemsize, out_itemsize, use_s_matmul,
                     max_tile=1024, vmem_budget_bytes=24 * 1024 * 1024):
    """Pick a lane-dense batch tile.

    Rules:
      * batch_tile == B (single full block, always a legal BlockSpec) when
        B <= 128; otherwise a multiple of 128 so the (T, batch_tile) output
        block is lane-dense/unmasked and the (batch_tile, Z) input block
        satisfies the sublane minimum for both f32 (8) and bf16 (16).
      * Keep >= 4 "parallel" grid steps when B allows, so v7x's two
        TensorCores both stay busy and the pipeline has depth to hide the
        shared-HBM DMA.
      * Fit a lane-padding-aware VMEM estimate into a conservative 24 MiB
        budget (v7x scoped default is 32 MiB of 64 MiB physical; v5e/v6e have
        128 MiB, so this is the safe common budget).
      * The grid is pl.cdiv(B, batch_tile) with a clipped last block, so B
        need not be a multiple of the tile (no illegal "best_any" fallback).
    """
    if B <= 128:
        return B
    cap = min(max_tile, B)
    if B >= 4 * 128:
        cap = min(cap, max(128, (B // 4 // 128) * 128))
    tile = max(128, (cap // 128) * 128)
    while tile > 128 and _vmem_bytes(tile, Z, T, x_itemsize, out_itemsize,
                                     use_s_matmul) > vmem_budget_bytes:
        tile -= 128
    return tile


def multitype_init_params(key, z_size, variable_sizes):
    """Deterministic parameter init matching nn.Linear shapes.

    Returns packed weight (Z, T) and bias (T, 1) where T = sum(variable_sizes).
    Size-1 variables use nn.Linear(1, 1, bias=False) in the original module,
    which is only shape-consistent when z_size == 1.
    """
    cols, bias = [], []
    for i, v in enumerate(variable_sizes):
        k = jax.random.fold_in(key, i)
        if v == 1:
            assert z_size == 1, "size-1 variables require z_size == 1 (as in the PyTorch module)"
            bound = 1.0  # 1/sqrt(in_features=1)
            w = jax.random.uniform(k, (1, 1), jnp.float32, -bound, bound)  # (Z=1, 1)
            cols.append(w)
            bias.append(jnp.zeros((1,), jnp.float32))
        else:
            bound = 1.0 / float(np.sqrt(z_size))
            kw, kb = jax.random.split(k)
            w = jax.random.uniform(kw, (z_size, v), jnp.float32, -bound, bound)  # = W_i.T
            b = jax.random.uniform(kb, (v,), jnp.float32, -bound, bound)
            cols.append(w)
            bias.append(b)
    w_packed = jnp.concatenate(cols, axis=1)              # (Z, T)
    b_packed = jnp.concatenate(bias, axis=0)[:, None]     # (T, 1)
    assert w_packed.shape == (z_size, sum(variable_sizes))
    return w_packed, b_packed


@functools.partial(jax.jit, static_argnames=("variable_sizes", "batch_tile"))
def multitype_forward(x, w_packed, b_packed, *, variable_sizes, batch_tile=None):
    """Forward pass of MultiType (training=True, temperature=None, concat=True).

    Returns (B, T) to match the PyTorch module; the kernel itself computes and
    stores the lane-dense transposed (T, B) layout.
    """
    B, Z = x.shape
    T = sum(variable_sizes)
    assert w_packed.shape == (Z, T), (w_packed.shape, (Z, T))
    assert b_packed.shape == (T, 1), (b_packed.shape, (T, 1))
    if any(v == 1 for v in variable_sizes):
        # nn.Linear(1, 1, bias=False) on the size-1 variables only type-checks
        # against the shared latent when z_size == 1 (as in the PyTorch module).
        assert Z == 1, "size-1 variables require z_size == 1"

    segments = []
    off = 0
    for v in variable_sizes:
        segments.append((off, v))
        off += v
    segments = tuple(segments)

    # Keep the block-diagonal ones-matrix denominator only while S stays tiny;
    # past that the T^2*4 bytes of DMA and TB*T^2 matmul FLOPs stop being free.
    use_s_matmul = T <= 512

    if batch_tile is None:
        batch_tile = _pick_batch_tile(B, Z, T, x.dtype.itemsize, x.dtype.itemsize,
                                      use_s_matmul)
    if batch_tile != B:
        assert batch_tile % 128 == 0, (
            "batch_tile must be a multiple of 128 (lane-dense output block) "
            "or equal to the full batch")

    # Tiny one-time transpose so the kernel gets W^T (T, Z) for the NT matmul.
    w_t = jnp.transpose(w_packed)

    kernel = _make_multitype_kernel(segments, T, use_s_matmul)

    inputs = [x, w_t, b_packed]
    in_specs = [
        pl.BlockSpec((batch_tile, Z), lambda i: (i, 0)),
        # Constant index maps: Pallas skips the re-DMA when the block index
        # does not change between grid steps.
        pl.BlockSpec((T, Z), lambda i: (0, 0)),
        pl.BlockSpec((T, 1), lambda i: (0, 0)),
    ]
    if use_s_matmul:
        # Static block-diagonal "ones" matrix S (T, T): S[r, c] = 1 iff rows r
        # and c belong to the same variable segment.
        seg_ids = np.concatenate(
            [np.full((v,), i, dtype=np.int32) for i, v in enumerate(variable_sizes)])
        s_mat = jnp.asarray(
            (seg_ids[:, None] == seg_ids[None, :]).astype(np.float32))  # (T, T)
        inputs.append(s_mat)
        in_specs.append(pl.BlockSpec((T, T), lambda i: (0, 0)))

    out_t = pl.pallas_call(
        kernel,
        out_shape=jax.ShapeDtypeStruct((T, B), x.dtype),
        grid_spec=pltpu.PrefetchScalarGridSpec(
            num_scalar_prefetch=0,
            grid=(pl.cdiv(B, batch_tile),),   # clipped last block: any B works
            in_specs=in_specs,
            out_specs=pl.BlockSpec((T, batch_tile), lambda i: (0, i)),
        ),
        compiler_params=pltpu.CompilerParams(
            dimension_semantics=("parallel",),
        ),
    )(*inputs)

    # Back to the PyTorch (B, T) layout; T is tiny, so this XLA transpose is
    # negligible next to the x read.
    return jnp.transpose(out_t)


def multitype_reference(x, w_packed, b_packed, variable_sizes):
    """Pure-JAX reference mirroring the PyTorch forward (training=True)."""
    logits = (x.astype(jnp.float32) @ w_packed.astype(jnp.float32)
              + b_packed[:, 0][None, :])
    outs = []
    off = 0
    for v in variable_sizes:
        seg = logits[:, off:off + v]
        if v == 1:
            outs.append(seg)  # LeakyReLU(1) == identity
        else:
            outs.append(jax.nn.softmax(seg, axis=1))
        off += v
    return jnp.concatenate(outs, axis=1).astype(x.dtype)


if __name__ == "__main__":
    key = jax.random.PRNGKey(0)
    k_x, k_p = jax.random.split(key)

    # Small shapes consistent with the module: latent z_size=32, three
    # categorical variables of sizes 3, 5, 4.  batch=1024 is still tiny
    # (128 KiB of input) but exercises the auto-picked lane-dense tiles
    # (256 rows -> a 4-step "parallel" grid for v7x's two TensorCores).
    z_size = 32
    variable_sizes = (3, 5, 4)
    batch = 1024

    x = jax.random.normal(k_x, (batch, z_size), dtype=jnp.float32)
    w_packed, b_packed = multitype_init_params(k_p, z_size, variable_sizes)

    out = multitype_forward(x, w_packed, b_packed, variable_sizes=variable_sizes)
    out = jax.block_until_ready(out)

    ref = multitype_reference(x, w_packed, b_packed, variable_sizes)
    assert out.shape == (batch, sum(variable_sizes))
    assert jnp.allclose(out, ref, atol=1e-5, rtol=1e-5), "mismatch vs reference"

    print("KERNEL_OK")
</pallas_src>

<mosaic_0001>
module attributes {stable_mosaic.version = 11 : i64} {
  func.func @kernel(%arg0: i32, %arg1: memref<256x32xf32, #tpu.memory_space<vmem>>, %arg2: memref<12x32xf32, #tpu.memory_space<vmem>>, %arg3: memref<12x1xf32, #tpu.memory_space<vmem>>, %arg4: memref<12x12xf32, #tpu.memory_space<vmem>>, %arg5: memref<12x256xf32, #tpu.memory_space<vmem>>) attributes {dimension_semantics = [#tpu.dimension_semantics<parallel>], iteration_bounds = array<i64: 4>, scalar_prefetch = 0 : i64, scratch_operands = 0 : i64, tpu.core_type = #tpu.core_type<tc>, window_params = [{transform_indices = @transform_0, window_bounds = array<i64: 256, 32>}, {pipeline_mode = #tpu.pipeline_mode<synchronous>, transform_indices = @transform_1, window_bounds = array<i64: 12, 32>}, {pipeline_mode = #tpu.pipeline_mode<synchronous>, transform_indices = @transform_2, window_bounds = array<i64: 12, 1>}, {pipeline_mode = #tpu.pipeline_mode<synchronous>, transform_indices = @transform_3, window_bounds = array<i64: 12, 12>}, {transform_indices = @transform_4, window_bounds = array<i64: 12, 256>}]} {
    %c0 = arith.constant 0 : index
    %c0_0 = arith.constant 0 : index
    %0 = vector.load %arg2[%c0, %c0_0] : memref<12x32xf32, #tpu.memory_space<vmem>>, vector<12x32xf32>
    %c0_1 = arith.constant 0 : index
    %c0_2 = arith.constant 0 : index
    %1 = vector.load %arg1[%c0_1, %c0_2] : memref<256x32xf32, #tpu.memory_space<vmem>>, vector<256x32xf32>
    %cst = arith.constant dense<0.000000e+00> : vector<12x256xf32>
    %2 = tpu.matmul %0, %1, %cst {dimension_numbers = #tpu.dot_dimension_numbers<[1], [1], [0], [0], [0, 0, 1, 0], [], []>} : vector<12x32xf32>, vector<256x32xf32>, vector<12x256xf32> -> vector<12x256xf32>
    %c0_3 = arith.constant 0 : index
    %c0_4 = arith.constant 0 : index
    %3 = vector.load %arg3[%c0_3, %c0_4] : memref<12x1xf32, #tpu.memory_space<vmem>>, vector<12x1xf32>
    %4 = vector.broadcast %3 : vector<12x1xf32> to vector<12x256xf32>
    %5 = arith.addf %2, %4 : vector<12x256xf32>
    %6 = tpu.iota {dimensions = array<i32: 0>} : vector<12x1xi32>
    %cst_5 = arith.constant 0.000000e+00 : f32
    %7 = vector.broadcast %cst_5 : f32 to vector<12x256xf32>
    %c0_i32 = arith.constant 0 : i32
    %8 = vector.broadcast %c0_i32 : i32 to vector<12x1xi32>
    %9 = arith.cmpi sge, %6, %8 : vector<12x1xi32>
    %c3_i32 = arith.constant 3 : i32
    %10 = vector.broadcast %c3_i32 : i32 to vector<12x1xi32>
    %11 = arith.cmpi slt, %6, %10 : vector<12x1xi32>
    %12 = arith.andi %9, %11 : vector<12x1xi1>
    %cst_6 = arith.constant 0xFF800000 : f32
    %13 = vector.shape_cast %12 : vector<12x1xi1> to vector<12x1xi1>
    %14 = vector.broadcast %13 : vector<12x1xi1> to vector<12x256xi1>
    %15 = vector.broadcast %cst_6 : f32 to vector<12x256xf32>
    %16 = arith.select %14, %5, %15 : vector<12x256xi1>, vector<12x256xf32>
    %cst_7 = arith.constant dense<0xFF800000> : vector<256xf32>
    %17 = vector.multi_reduction <maximumf>, %16, %cst_7 [0] : vector<12x256xf32> to vector<256xf32>
    %18 = vector.shape_cast %17 : vector<256xf32> to vector<1x256xf32>
    %19 = vector.shape_cast %12 : vector<12x1xi1> to vector<12x1xi1>
    %20 = vector.broadcast %19 : vector<12x1xi1> to vector<12x256xi1>
    %21 = vector.shape_cast %18 : vector<1x256xf32> to vector<1x256xf32>
    %22 = vector.broadcast %21 : vector<1x256xf32> to vector<12x256xf32>
    %23 = arith.select %20, %22, %7 : vector<12x256xi1>, vector<12x256xf32>
    %c3_i32_8 = arith.constant 3 : i32
    %24 = vector.broadcast %c3_i32_8 : i32 to vector<12x1xi32>
    %25 = arith.cmpi sge, %6, %24 : vector<12x1xi32>
    %c8_i32 = arith.constant 8 : i32
    %26 = vector.broadcast %c8_i32 : i32 to vector<12x1xi32>
    %27 = arith.cmpi slt, %6, %26 : vector<12x1xi32>
    %28 = arith.andi %25, %27 : vector<12x1xi1>
    %cst_9 = arith.constant 0xFF800000 : f32
    %29 = vector.shape_cast %28 : vector<12x1xi1> to vector<12x1xi1>
    %30 = vector.broadcast %29 : vector<12x1xi1> to vector<12x256xi1>
    %31 = vector.broadcast %cst_9 : f32 to vector<12x256xf32>
    %32 = arith.select %30, %5, %31 : vector<12x256xi1>, vector<12x256xf32>
    %cst_10 = arith.constant dense<0xFF800000> : vector<256xf32>
    %33 = vector.multi_reduction <maximumf>, %32, %cst_10 [0] : vector<12x256xf32> to vector<256xf32>
    %34 = vector.shape_cast %33 : vector<256xf32> to vector<1x256xf32>
    %35 = vector.shape_cast %28 : vector<12x1xi1> to vector<12x1xi1>
    %36 = vector.broadcast %35 : vector<12x1xi1> to vector<12x256xi1>
    %37 = vector.shape_cast %34 : vector<1x256xf32> to vector<1x256xf32>
    %38 = vector.broadcast %37 : vector<1x256xf32> to vector<12x256xf32>
    %39 = arith.select %36, %38, %23 : vector<12x256xi1>, vector<12x256xf32>
    %c8_i32_11 = arith.constant 8 : i32
    %40 = vector.broadcast %c8_i32_11 : i32 to vector<12x1xi32>
    %41 = arith.cmpi sge, %6, %40 : vector<12x1xi32>
    %c12_i32 = arith.constant 12 : i32
    %42 = vector.broadcast %c12_i32 : i32 to vector<12x1xi32>
    %43 = arith.cmpi slt, %6, %42 : vector<12x1xi32>
    %44 = arith.andi %41, %43 : vector<12x1xi1>
    %cst_12 = arith.constant 0xFF800000 : f32
    %45 = vector.shape_cast %44 : vector<12x1xi1> to vector<12x1xi1>
    %46 = vector.broadcast %45 : vector<12x1xi1> to vector<12x256xi1>
    %47 = vector.broadcast %cst_12 : f32 to vector<12x256xf32>
    %48 = arith.select %46, %5, %47 : vector<12x256xi1>, vector<12x256xf32>
    %cst_13 = arith.constant dense<0xFF800000> : vector<256xf32>
    %49 = vector.multi_reduction <maximumf>, %48, %cst_13 [0] : vector<12x256xf32> to vector<256xf32>
    %50 = vector.shape_cast %49 : vector<256xf32> to vector<1x256xf32>
    %51 = vector.shape_cast %44 : vector<12x1xi1> to vector<12x1xi1>
    %52 = vector.broadcast %51 : vector<12x1xi1> to vector<12x256xi1>
    %53 = vector.shape_cast %50 : vector<1x256xf32> to vector<1x256xf32>
    %54 = vector.broadcast %53 : vector<1x256xf32> to vector<12x256xf32>
    %55 = arith.select %52, %54, %39 : vector<12x256xi1>, vector<12x256xf32>
    %56 = arith.subf %5, %55 : vector<12x256xf32>
    %57 = math.exp %56 : vector<12x256xf32>
    %c0_14 = arith.constant 0 : index
    %c0_15 = arith.constant 0 : index
    %58 = vector.load %arg4[%c0_14, %c0_15] : memref<12x12xf32, #tpu.memory_space<vmem>>, vector<12x12xf32>
    %cst_16 = arith.constant dense<0.000000e+00> : vector<12x256xf32>
    %59 = tpu.matmul %58, %57, %cst_16 {dimension_numbers = #tpu.dot_dimension_numbers<[1], [0], [0], [1], [0, 0, 1, 1], [], []>} : vector<12x12xf32>, vector<12x256xf32>, vector<12x256xf32> -> vector<12x256xf32>
    %60 = arith.divf %57, %59 : vector<12x256xf32>
    %c0_17 = arith.constant 0 : index
    %c0_18 = arith.constant 0 : index
    %61 = vector.load %arg5[%c0_17, %c0_18] : memref<12x256xf32, #tpu.memory_space<vmem>>, vector<12x256xf32>
    tpu.vector_store %arg5[%c0_17, %c0_18], %60 {strides = array<i32>} : memref<12x256xf32, #tpu.memory_space<vmem>>, vector<12x256xf32>,
    return
  }
  func.func @transform_0(%arg0: i32) -> (i32, i32) {
    %c0_i32 = arith.constant 0 : i32
    %c0_i32_0 = arith.constant 0 : i32
    return %arg0, %c0_i32 : i32, i32
  }
  func.func @transform_1(%arg0: i32) -> (i32, i32) {
    %c0_i32 = arith.constant 0 : i32
    %c0_i32_0 = arith.constant 0 : i32
    %c0_i32_1 = arith.constant 0 : i32
    return %c0_i32, %c0_i32_0 : i32, i32
  }
  func.func @transform_2(%arg0: i32) -> (i32, i32) {
    %c0_i32 = arith.constant 0 : i32
    %c0_i32_0 = arith.constant 0 : i32
    %c0_i32_1 = arith.constant 0 : i32
    return %c0_i32, %c0_i32_0 : i32, i32
  }
  func.func @transform_3(%arg0: i32) -> (i32, i32) {
    %c0_i32 = arith.constant 0 : i32
    %c0_i32_0 = arith.constant 0 : i32
    %c0_i32_1 = arith.constant 0 : i32
    return %c0_i32, %c0_i32_0 : i32, i32
  }
  func.func @transform_4(%arg0: i32) -> (i32, i32) {
    %c0_i32 = arith.constant 0 : i32
    %c0_i32_0 = arith.constant 0 : i32
    return %c0_i32, %arg0 : i32, i32
  }
}

</mosaic_0001>

<bundles_post_ra>
// kernel: multitype_forward.1
= control target key start
LH: loop header
LB: loop body
LE: loop exit
PB: predicated region body
PF: predicated region fallthrough
CT: control target
= control target key end

     0   :  { %9 = vsyncpa [#allocation3], 0  ;;  %s1147_s0 = inlined_call_operand.vmem [shape: f32[1024,32], index: 0, kind: input, shape index: {}]   ;;  %s1148_s1 = inlined_call_operand.vmem [shape: f32[12,32], index: 1, kind: input, shape index: {}]   ;;  %s1149_s2 = inlined_call_operand.vmem [shape: f32[12,1], index: 2, kind: input, shape index: {}]   ;;  %s1150_s3 = inlined_call_operand.vmem [shape: f32[12,12], index: 3, kind: input, shape index: {}]   ;;  %s1151_s4 = inlined_call_operand.hbm [shape: f32[12,1024], index: 4, kind: output, shape index: {}]  }
   0x1   :  { %11 = vsyncpa [#allocation3 + $0x1], 0  ;;  %s923_s15 = smov 0   ;;  %s925_s16 = smov 0  }
   0x2   :  { %s927_s17 = smov 0   ;;  %s929_s18 = smov 0  }
   0x3 LB: > { %s944_s19 = sadd.s32 4294967295, %s892_s18   ;;  %s715_s20 = sadd.s32 4294967294, %s892_s18   ;;  %s892_s18 = sphi %s929_s18, %s1157_s18   ;;  %s888_s17 = sphi %s927_s17, %s1156_s17   ;;  %s884_s16 = sphi %s925_s16, %s1155_s16   ;;  %s880_s15 = sphi %s923_s15, %s1154_s15  }
   0x4   : > { %s948_s21 = sadd.s32 1, %s892_s18   ;;  %s113_s22 = sadd.s32 1, %s888_s17 }
   0x5   : > { %s110_s23 = ssub.s32 %s892_s18, %s948_s21  ;;  %p123_p0 = scmp.ne.s32.totalorder %s888_s17, %s884_s16 }
   0x6   : > { %p111_p1 = scmp.eq.s32.totalorder %s110_s23, 0  ;;  %p124_p2 = scmp.eq.s32.totalorder %s944_s19, 3 }
   0x7   : > { %p129_p3 = scmp.ne.s32.totalorder %s884_s16, %s880_s15  ;;  %p130_p4 = scmp.eq.s32.totalorder %s715_s20, 3 }
   0x8   : > { %s959_s24 = scalar_select %p111_p1, %s888_s17, %s113_s22  }
   0x9   : > { %p961_p5 = por %p124_p2, %p123_p0  ;;  %p965_p6 = por %p130_p4, %p129_p3 }
   0xa   : > { %p718_p7 = scmp.ge.s32.totalorder %s892_s18, 1  ;;  %p166_p8 = scmp.lt.s32.totalorder %s892_s18, 5 }
   0xc   : > { %p167_p9 = pnand %p718_p7, %p166_p8 }
   0xd   : > { %s720_s27 = sshll.u32 (!%p167_p9), %s944_s19, 5  ;;  %s769_s29 = sshll.u32 (!%p167_p9), %s944_s19, 4 }
   0xe   : > { %170 = sbr.rel (%p167_p9) target bundleno = 416 (0x1a0), region = 36  ;;  %p193_p10 = scmp.lt.s32.totalorder (!%p167_p9), %s720_s27, 127 }
   0xf   : > { %s649_s19 = scalar_lea.hbm (!%p167_p9), %s1151_s4, %s769_s29  ;;  %s850_s14 = scalar_lea.hbm (!%p167_p9), %s1151_s4, 128 }
  0x10   : > { %s652_s8 = sshll.u32 (!%p167_p9), %s649_s19, 4  ;;  %s653_s8 = int_to_ptr.hbm [resolvable:$true] %s652_s8 }
  0x11   : > { %s844_s10 = sshra.s32 (!%p167_p9), %s653_s8, 4  ;;  %s845_s10 = int_to_ptr.hbm [resolvable:$true] %s844_s10 }
  0x12   : > { %s846_s11 = scalar_lea.hbm (!%p167_p9), %s845_s10, 32  ;;  %p851_p0 = scmp.lt.s32.totalorder (!%p167_p9), %s845_s10, %s1151_s4 }
  0x13   : > { %s1159_s27 = smov (!%p193_p10, %s720_s27), 127  ;;  %vm245_vm0 = vcmask 261120   ;;  %v234_v18 = vld [vmem:[%s1149_s2 + $0x8] sm:$0xf]  ;;  %v894_v21 = vmov 0   ;;  %v233_v24 = vld [vmem:[%s1149_s2] sm:$0xff]  ;;  %v394_v38 = vlaneseq  ;;  %p847_p11 = scmp.ne.s32.totalorder %s845_s10, %s846_s11 }
  0x14   : > { %s721_s28 = sshll.u32 %s1159_s27, 3  ;;  %813 = vset.pattern.permute.xlu0 %v894_v21  ;;  %v199_v35 = vld [vmem:[%s1148_s1] sm:$0xff]  ;;  %v200_v36 = vld [vmem:[%s1148_s1 + $0x8] sm:$0xf]  ;;  %vm411_vm4 = vcmask 1043456   ;;  %vm514_vm5 = vcmask 97280   ;;  %p852_p1 = scmp.lt.s32.totalorder %s850_s14, %s846_s11 }
  0x15   : > { %s975_s5 = scalar_lea.vmem %s1147_s0, %s721_s28  ;;  %242 = vperm.xlu0 %813, %v234_v18   ;;  %v395_v39 = vshrl.u32 %v394_v38, 7  ;;  %s189_s27 = sand.u32 1, %s884_s16  }
  0x16   : > { %v216_v0 = vld [vmem:[%s975_s5 + $0x78] sm:$0xff]  ;;  %v215_v2 = vld [vmem:[%s975_s5 + $0x70] sm:$0xff]  ;;  %v214_v4 = vld [vmem:[%s975_s5 + $0x68] sm:$0xff]  ;;  %s719_s28 = sshll.u32 %s189_s27, 5  ;;  %s638_s9 = scalar_lea.sflag [#allocation3], %s189_s27 }
  0x17   : > { %v232_v1 = vld [vmem:[%s975_s5 + $0xf8] sm:$0xff]  ;;  %722 = vmatpush.xpose.msk.msra.mxu0 %vm245_vm0, %v216_v0  ;;  %v231_v3 = vld [vmem:[%s975_s5 + $0xf0] sm:$0xff]  ;;  %v230_v5 = vld [vmem:[%s975_s5 + $0xe8] sm:$0xff]  ;;  %vm399_vm1 = vcmp.lt.s32.totalorder %v395_v39, 3  ;;  %vm432_vm2 = vcmp.ge.s32.totalorder %v395_v39, 3  ;;  %v396_v45 = vadd.s32 8, %v395_v39  ;;  %p848_p12 = pnand %p847_p11, %p961_p5  ;;  %p853_p2 = por %p852_p1, %p851_p0 }
  0x18   : > { %740 = vmatpush.xpose.msk.msra.mxu1 %vm245_vm0, %v232_v1  ;;  %v213_v6 = vld [vmem:[%s975_s5 + $0x60] sm:$0xff]  ;;  %v212_v8 = vld [vmem:[%s975_s5 + $0x58] sm:$0xff]  ;;  %v211_v10 = vld [vmem:[%s975_s5 + $0x50] sm:$0xff]  ;;  %s1103_s30 = scalar_lea.vmem [#allocation2], %s719_s28 }
  0x19   : > { %v229_v7 = vld [vmem:[%s975_s5 + $0xe0] sm:$0xff]  ;;  %v228_v9 = vld [vmem:[%s975_s5 + $0xd8] sm:$0xff]  ;;  %v227_v11 = vld [vmem:[%s975_s5 + $0xd0] sm:$0xff]  ;;  %vm469_vm3 = vcmp.lt.s32.totalorder %v396_v45, 12  ;;  %s650_s7 = sshll.u32 %s1103_s30, 4  ;;  %p849_p13 = pneg %p848_p12  ;;  %s651_s7 = int_to_ptr.vmem [resolvable:$true] %s650_s7 }
  0x1a   : > { %v210_v12 = vld [vmem:[%s975_s5 + $0x48] sm:$0xff]  ;;  %v209_v14 = vld [vmem:[%s975_s5 + $0x40] sm:$0xff]  ;;  %v208_v16 = vld [vmem:[%s975_s5 + $0x38] sm:$0xff] }
  0x1b   : > { %723 = vmatpush.xpose.msk.msra.mxu0 %vm245_vm0, %v215_v2  ;;  %v226_v13 = vld [vmem:[%s975_s5 + $0xc8] sm:$0xff]  ;;  %v225_v15 = vld [vmem:[%s975_s5 + $0xc0] sm:$0xff]  ;;  %v224_v17 = vld [vmem:[%s975_s5 + $0xb8] sm:$0xff]  ;;  %p854_p3 = pnand %p853_p2, %p849_p13 }
  0x1c   : > { %741 = vmatpush.xpose.msk.msra.mxu1 %vm245_vm0, %v231_v3  ;;  %v207_v19 = vld [vmem:[%s975_s5 + $0x30] sm:$0xff]  ;;  %v206_v22 = vld [vmem:[%s975_s5 + $0x28] sm:$0xff]  ;;  %v205_v25 = vld [vmem:[%s975_s5 + $0x20] sm:$0xff] }
  0x1d   : > { %v223_v20 = vld [vmem:[%s975_s5 + $0xb0] sm:$0xff]  ;;  %v222_v23 = vld [vmem:[%s975_s5 + $0xa8] sm:$0xff]  ;;  %v221_v26 = vld [vmem:[%s975_s5 + $0xa0] sm:$0xff]  ;;  %237 = vperm.xlu0 %813, %v233_v24  }
  0x1e   : > { %v204_v27 = vld [vmem:[%s975_s5 + $0x18] sm:$0xff]  ;;  %v203_v29 = vld [vmem:[%s975_s5 + $0x10] sm:$0xff]  ;;  %v202_v31 = vld [vmem:[%s975_s5 + $0x8] sm:$0xff] }
  0x1f   : > { %724 = vmatpush.xpose.msk.msra.mxu0 %vm245_vm0, %v214_v4  ;;  %v220_v28 = vld [vmem:[%s975_s5 + $0x98] sm:$0xff]  ;;  %v219_v30 = vld [vmem:[%s975_s5 + $0x90] sm:$0xff]  ;;  %v218_v32 = vld [vmem:[%s975_s5 + $0x88] sm:$0xff] }
  0x20   : > { %742 = vmatpush.xpose.msk.msra.mxu1 %vm245_vm0, %v230_v5  ;;  %v201_v33 = vld [vmem:[%s975_s5] sm:$0xff] }
  0x21   : > { %v217_v34 = vld [vmem:[%s975_s5 + $0x80] sm:$0xff] }
  0x23   : > { %725 = vmatpush.xpose.msk.msra.mxu0 %vm245_vm0, %v213_v6 }
  0x24   : > { %743 = vmatpush.xpose.msk.msra.mxu1 %vm245_vm0, %v229_v7 }
  0x27   : > { %726 = vmatpush.xpose.msk.msra.mxu0 %vm245_vm0, %v212_v8 }
  0x28   : > { %744 = vmatpush.xpose.msk.msra.mxu1 %vm245_vm0, %v228_v9 }
  0x2b   : > { %727 = vmatpush.xpose.msk.msra.mxu0 %vm245_vm0, %v211_v10 }
  0x2c   : > { %745 = vmatpush.xpose.msk.msra.mxu1 %vm245_vm0, %v227_v11 }
  0x2f   : > { %728 = vmatpush.xpose.msk.msra.mxu0 %vm245_vm0, %v210_v12 }
  0x30   : > { %746 = vmatpush.xpose.msk.msra.mxu1 %vm245_vm0, %v226_v13 }
  0x33   : > { %729 = vmatpush.xpose.msk.msra.mxu0 %vm245_vm0, %v209_v14 }
  0x34   : > { %747 = vmatpush.xpose.msk.msra.mxu1 %vm245_vm0, %v225_v15 }
  0x37   : > { %730 = vmatpush.xpose.msk.msra.mxu0 %vm245_vm0, %v208_v16 }
  0x38   : > { %748 = vmatpush.xpose.msk.msra.mxu1 %vm245_vm0, %v224_v17 }
  0x3b   : > { %731 = vmatpush.xpose.msk.msra.mxu0 %vm245_vm0, %v207_v19 }
  0x3c   : > { %749 = vmatpush.xpose.msk.msra.mxu1 %vm245_vm0, %v223_v20 }
  0x3f   : > { %732 = vmatpush.xpose.msk.msra.mxu0 %vm245_vm0, %v206_v22 }
  0x40   : > { %750 = vmatpush.xpose.msk.msra.mxu1 %vm245_vm0, %v222_v23 }
  0x43   : > { %733 = vmatpush.xpose.msk.msra.mxu0 %vm245_vm0, %v205_v25 }
  0x44   : > { %751 = vmatpush.xpose.msk.msra.mxu1 %vm245_vm0, %v221_v26 }
  0x47   : > { %734 = vmatpush.xpose.msk.msra.mxu0 %vm245_vm0, %v204_v27 }
  0x48   : > { %752 = vmatpush.xpose.msk.msra.mxu1 %vm245_vm0, %v220_v28 }
  0x4b   : > { %735 = vmatpush.xpose.msk.msra.mxu0 %vm245_vm0, %v203_v29 }
  0x4c   : > { %753 = vmatpush.xpose.msk.msra.mxu1 %vm245_vm0, %v219_v30 }
  0x4f   : > { %736 = vmatpush.xpose.msk.msra.mxu0 %vm245_vm0, %v202_v31 }
  0x50   : > { %754 = vmatpush.xpose.msk.msra.mxu1 %vm245_vm0, %v218_v32 }
  0x53   : > { %737 = vmatpush.xpose.msk.msra.mxu0 %vm245_vm0, %v201_v33 }
  0x54   : > { %755 = vmatpush.xpose.msk.msra.mxu1 %vm245_vm0, %v217_v34 }
  0x56   : > { %738 = vmatmul.msk.f32.vlgmr.msra.gmra.mxu0 %vm245_vm0, %v199_v35 }
  0x57   : > { %756 = vmatmul.msk.f32.vlgmr.msra.gmra.mxu1 %vm245_vm0, %v199_v35 }
  0x5e   : > { %739 = vmatmul.msk.f32.gmra.mxu0 %vm245_vm0, %v200_v36 }
  0x5f   : > { %757 = vmatmul.msk.f32.gmra.mxu1 %vm245_vm0, %v200_v36 }
  0x87   : > { %v243_v37 = vpop.permute.xlu0 %242 }
  0x8f   : > { %v238_v40 = vpop.permute.xlu0 %237 }
  0xd3   : > { %v365_v41 = vpop.f32.mrf.mxu0 }
  0xd4   : > { %v388_v42 = vpop.f32.mrf.mxu1  ;;  %v1057_v43 = vadd.f32 %v365_v41, %v238_v40 }
  0xd5   : > { %v1059_v44 = vadd.f32 %v388_v42, %v238_v40 }
  0xd6   : > { %v407_v46 = vsel %vm399_vm1, %v1057_v43, -inf  ;;  %v442_v47 = vsel %vm432_vm2, %v1057_v43, -inf }
  0xd7   : > { %v408_v48 = vsel %vm399_vm1, %v1059_v44, -inf  ;;  %v443_v49 = vsel %vm432_vm2, %v1059_v44, -inf  ;;  %v414_v50 = vrot.slane %v407_v46, 4  ;;  %v448_v51 = vrot.slane %v442_v47, 4 }
  0xd8   : > { %v422_v52 = vrot.slane %v408_v48, 4  ;;  %v456_v53 = vrot.slane %v443_v49, 4 }
  0xd9   : > { %v415_v54 = vmax.f32 %v407_v46, %v414_v50  ;;  %v449_v55 = vmax.f32 %v442_v47, %v448_v51 }
  0xda   : > { %v423_v56 = vmax.f32 %v408_v48, %v422_v52  ;;  %v457_v57 = vmax.f32 %v443_v49, %v456_v53  ;;  %v513_v49 = vld [vmem:[%s1150_s3 + $0x8] sm:$0xf] }
  0xdb   : > { %v416_v58 = vrot.slane %v415_v54, 2  ;;  %v450_v59 = vrot.slane %v449_v55, 2  ;;  %v368_v62 = vpop.f32.mrf.mxu0 }
  0xdc   : > { %v424_v60 = vrot.slane %v423_v56, 2  ;;  %v458_v61 = vrot.slane %v457_v57, 2  ;;  %v391_v63 = vpop.f32.mrf.mxu1  ;;  %v369_v0 = vadd.f32 %v368_v62, %v243_v37 }
  0xdd   : > { %v392_v1 = vadd.f32 %v391_v63, %v243_v37  ;;  %v417_v2 = vmax.f32 %v415_v54, %v416_v58  ;;  %v451_v4 = vmax.f32 %v449_v55, %v450_v59 }
  0xde   : > { %v425_v3 = vmax.f32 %v423_v56, %v424_v60  ;;  %v478_v5 = vsel %vm469_vm3, %v369_v0, -inf  ;;  %v459_v8 = vmax.f32 %v457_v57, %v458_v61 }
  0xdf   : > { %v479_v6 = vsel %vm469_vm3, %v392_v1, -inf  ;;  %v418_v7 = vrot.slane %v417_v2, 1  ;;  %v480_v10 = vsel %vm411_vm4, %v478_v5, -inf  ;;  %v452_v12 = vrot.slane %v451_v4, 1 }
  0xe0   : > { %v426_v9 = vrot.slane %v425_v3, 1  ;;  %v488_v11 = vsel %vm411_vm4, %v479_v6, -inf  ;;  %v482_v13 = vrot.slane %v480_v10, 4  ;;  %v460_v16 = vrot.slane %v459_v8, 1 }
  0xe1   : > { %v490_v14 = vrot.slane %v488_v11, 4  ;;  %v419_v15 = vmax.f32 %v417_v2, %v418_v7  ;;  %v453_v20 = vmax.f32 %v451_v4, %v452_v12 }
  0xe2   : > { %v427_v17 = vmax.f32 %v425_v3, %v426_v9  ;;  %v483_v18 = vmax.f32 %v480_v10, %v482_v13  ;;  %v461_v24 = vmax.f32 %v459_v8, %v460_v16 }
  0xe3   : > { %v491_v19 = vmax.f32 %v488_v11, %v490_v14  ;;  %v428_v23 = vsel %vm399_vm1, %v419_v15, 0.0 }
  0xe4   : > { %v484_v21 = vrot.slane %v483_v18, 2  ;;  %v429_v25 = vsel %vm399_vm1, %v427_v17, 0.0  ;;  %v462_v28 = vsel %vm432_vm2, %v453_v20, %v428_v23 }
  0xe5   : > { %v492_v22 = vrot.slane %v491_v19, 2  ;;  %v463_v31 = vsel %vm432_vm2, %v461_v24, %v429_v25  ;;  %v500_v34 = vsub.f32 %v1057_v43, %v462_v28  ;;  %v512_v43 = vld [vmem:[%s1150_s3] sm:$0xff] }
  0xe6   : > { %v485_v26 = vmax.f32 %v483_v18, %v484_v21  ;;  %v501_v35 = vsub.f32 %v1059_v44, %v463_v31 }
  0xe7   : > { %v493_v27 = vmax.f32 %v491_v19, %v492_v22  ;;  %v504_v41 = vmul.f32 1.442695, %v500_v34 }
  0xe8   : > { %v486_v29 = vrot.slane %v485_v26, 1  ;;  %v506_v47 = vmul.f32 1.442695, %v501_v35 }
  0xe9   : > { %v494_v30 = vrot.slane %v493_v27, 1 }
  0xea   : > { %v487_v32 = vmax.f32 %v485_v26, %v486_v29 }
  0xeb   : > { %v495_v33 = vmax.f32 %v493_v27, %v494_v30 }
  0xec   : > { %v498_v36 = vsel %vm469_vm3, %v487_v32, 0.0 }
  0xed   : > { %v499_v37 = vsel %vm469_vm3, %v495_v33, 0.0  ;;  %v502_v38 = vsub.f32 %v369_v0, %v498_v36 }
  0xee   : > { %v503_v40 = vsub.f32 %v392_v1, %v499_v37 }
  0xef   : > { %v508_v42 = vmul.f32 1.442695, %v502_v38 }
  0xf0   : > { %v510_v46 = vmul.f32 1.442695, %v503_v40 }
  0xf1   : > { %814 = vpow2.f32 %v508_v42 }
  0xf2   : > { %816 = vpow2.f32 %v510_v46 }
  0xf3   : > { %818 = vpow2.f32 %v504_v41 }
  0xf4   : > { %820 = vpow2.f32 %v506_v47 }
  0xf7   : > { %v1081_v39 = vpop.eup %814 }
  0xf8   : > { %v1083_v48 = vpop.eup %816  ;;  %758 = vmatpush.msk.msra.mxu2 %vm411_vm4, %v1081_v39 }
  0xf9   : > { %v819_v44 = vpop.eup %818  ;;  %761 = vmatpush.msk.msra.mxu3 %vm411_vm4, %v1083_v48 }
  0xfa   : > { %v821_v45 = vpop.eup %820  ;;  %542 = vmatpush.msra.mxu2 %v819_v44 }
  0xfb   : > { %565 = vmatpush.msra.mxu3 %v821_v45  ;;  %759 = vmatmul.msk.f32.vlgmr.msra.gmra.mxu2 %vm514_vm5, %v512_v43 }
  0xfc   : > { %762 = vmatmul.msk.f32.vlgmr.msra.gmra.mxu3 %vm514_vm5, %v512_v43 }
 0x103   : > { %760 = vmatmul.msk.f32.gmra.mxu2 %vm514_vm5, %v513_v49 }
 0x104   : > { %763 = vmatmul.msk.f32.gmra.mxu3 %vm514_vm5, %v513_v49 }
 0x17e   : > { %v544_v50 = vpop.f32.mrf.mxu2 }
 0x17f   : > { %822 = vrcp.f32 %v544_v50  ;;  %v567_v51 = vpop.f32.mrf.mxu3  ;;  %v584_v59 = vand.u32 2147483648, %v544_v50  ;;  %v582_v62 = vand.u32 2147483647, %v544_v50  ;;  %vm578_vm8 = vweird.f32 %v544_v50 }
 0x180   : > { %824 = vrcp.f32 %v567_v51  ;;  %v599_v63 = vand.u32 2147483648, %v567_v51  ;;  %v597_v1 = vand.u32 2147483647, %v567_v51  ;;  %vm593_vm10 = vweird.f32 %v567_v51 }
 0x181   : > { %v585_v4 = vor.u32 1.1754944e-38, %v584_v59  ;;  %vm583_vm11 = vcmp.eq.f32.partialorder %v582_v62, 8.507059e+37 }
 0x182   : > { %v600_v8 = vor.u32 1.1754944e-38, %v599_v63  ;;  %vm598_vm13 = vcmp.eq.f32.partialorder %v597_v1, 8.507059e+37 }
 0x185   : > { %v823_v52 = vpop.eup %822 }
 0x186   : > { %v825_v53 = vpop.eup %824  ;;  %v574_v54 = vmul.f32 %v823_v52, %v544_v50  ;;  %v547_v55 = vpop.f32.mrf.mxu2  ;;  %vm579_vm6 = vweird.f32 %v823_v52 }
 0x187   : > { %v589_v56 = vmul.f32 %v825_v53, %v567_v51  ;;  %826 = vrcp.f32 %v547_v55  ;;  %v1095_v57 = vpop.f32.mrf.mxu3  ;;  %vm594_vm7 = vweird.f32 %v825_v53  ;;  %vm580_vm9 = vmor %vm578_vm8, %vm579_vm6  ;;  %v614_v17 = vand.u32 2147483648, %v547_v55 }
 0x188   : > { %v575_v58 = vsub.f32 1.0, %v574_v54  ;;  %828 = vrcp.f32 %v1095_v57  ;;  %vm595_vm12 = vmor %vm593_vm10, %vm594_vm7  ;;  %v612_v20 = vand.u32 2147483647, %v547_v55  ;;  %v629_v21 = vand.u32 2147483648, %v1095_v57 }
 0x189   : > { %v590_v60 = vsub.f32 1.0, %v589_v56  ;;  %v627_v23 = vand.u32 2147483647, %v1095_v57  ;;  %vm608_vm0 = vweird.f32 %v547_v55  ;;  %v615_v25 = vor.u32 1.1754944e-38, %v614_v17 }
 0x18a   : > { %v576_v61 = vmul.f32 %v823_v52, %v575_v58  ;;  %vm623_vm2 = vweird.f32 %v1095_v57  ;;  %vm613_vm3 = vcmp.eq.f32.partialorder %v612_v20, 8.507059e+37  ;;  %v630_v28 = vor.u32 1.1754944e-38, %v629_v21 }
 0x18b   : > { %v591_v0 = vmul.f32 %v825_v53, %v590_v60  ;;  %vm628_vm5 = vcmp.eq.f32.partialorder %v627_v23, 8.507059e+37 }
 0x18c   : > { %v577_v2 = vadd.f32 %v823_v52, %v576_v61 }
 0x18d   : > { %v827_v3 = vpop.eup %826  ;;  %v592_v5 = vadd.f32 %v825_v53, %v591_v0 }
 0x18e   : > { %v829_v6 = vpop.eup %828  ;;  %v581_v7 = vsel %vm580_vm9, %v823_v52, %v577_v2  ;;  %v604_v9 = vmul.f32 %v827_v3, %v547_v55  ;;  %vm609_vm14 = vweird.f32 %v827_v3 }
 0x18f   : > { %v586_v10 = vsel %vm583_vm11, %v585_v4, %v581_v7  ;;  %v596_v11 = vsel %vm595_vm12, %v825_v53, %v592_v5  ;;  %v619_v12 = vmul.f32 %v829_v6, %v1095_v57  ;;  %vm624_vm15 = vweird.f32 %v829_v6  ;;  %vm610_vm1 = vmor %vm608_vm0, %vm609_vm14 }
 0x190   : > { %v587_v13 = vmul.f32 %v819_v44, %v586_v10  ;;  %v601_v14 = vsel %vm598_vm13, %v600_v8, %v596_v11  ;;  %v605_v15 = vsub.f32 1.0, %v604_v9  ;;  %vm625_vm4 = vmor %vm623_vm2, %vm624_vm15 }
 0x191   : > { %v602_v16 = vmul.f32 %v821_v45, %v601_v14  ;;  %v620_v18 = vsub.f32 1.0, %v619_v12 }
 0x192   : > { %633 = vst [vmem:[%s1103_s30] sm:$0xff] %v587_v13  ;;  %v606_v19 = vmul.f32 %v827_v3, %v605_v15 }
 0x193   : > { %634 = vst [vmem:[%s1103_s30 + $0x8] sm:$0xff] %v602_v16  ;;  %v621_v22 = vmul.f32 %v829_v6, %v620_v18 }
 0x194   : > { %v607_v24 = vadd.f32 %v827_v3, %v606_v19 }
 0x195   : > { %v622_v26 = vadd.f32 %v829_v6, %v621_v22 }
 0x196   : > { %v611_v27 = vsel %vm610_vm1, %v827_v3, %v607_v24 }
 0x197   : > { %v616_v29 = vsel %vm613_vm3, %v615_v25, %v611_v27  ;;  %v626_v30 = vsel %vm625_vm4, %v829_v6, %v622_v26 }
 0x198   : > { %v617_v31 = vmul.f32 %v1081_v39, %v616_v29  ;;  %v631_v32 = vsel %vm628_vm5, %v630_v28, %v626_v30 }
 0x199   : > { %v632_v33 = vmul.f32 %v1083_v48, %v631_v32 }
 0x19a   : > { %635 = vst [vmem:[%s1103_s30 + $0x10] sm:$0xf] %v617_v31 }
 0x19b   : > { %636 = vst [vmem:[%s1103_s30 + $0x18] sm:$0xf] %v632_v33 }
 0x19c   : > { %857 = shalt.err (!%p854_p3)
}
 0x19d   : > { %s895_s23 = smov 256   ;;  %s896_s27 = smov 1024  }
 0x19e   : > { %s897_s28 = smov 16  }
 0x19f   : > { %770 = dma.vmem_to_hbm [thread:$0]  (%p961_p5), %s651_s7, 512, %s653_s8, %s638_s9, %s895_s23, %s896_s27, %s897_s28  }
 0x1a0 PF: > { %p776_p4 = scmp.ge.s32.totalorder %s892_s18, 2  ;;  %s667_s29 = sand.u32 1, %s880_s15  }
 0x1a1   : > { %s668_s30 = scalar_lea.sflag [#allocation3], %s667_s29 }
 0x1a2   : > { %p773_p7 = pnand %p776_p4, %p965_p6 }
 0x1a4   : > { %p774_p8 = pneg %p773_p7 }
 0x1a6   : > { %875 = dma.done.wait (%p774_p8), %s668_s30, 512  }
 0x1a7   : > { %877 = vsyncadd (%p774_p8), %s668_s30, 4294966784  ;;  %p14_p9 = scmp.ge.s32.totalorder %s948_s21, 6   ;;  %s1154_s15 = smov %s884_s16 }
 0x1a8   : > { %s1155_s16 = smov %s888_s17  ;;  %s1156_s17 = smov %s959_s24 }
 0x1a9   : > { %s1157_s18 = smov %s948_s21  ;;  %16 = sbr.rel (!%p14_p9) target bundleno = 3 (0x3), region = 71 }
 0x1ae   :  { %674 = vsyncpa [#allocation3], 1 }
 0x1af   :  { %676 = vsyncpa [#allocation3 + $0x1], 1 }

</bundles_post_ra>
